<compile_context>
chip_gen: v7x
topology: tpu7x:2x2x1
jax: 0.10.0
libtpu: 0.0.40
codegen_flags: <defaults>
</compile_context>

<pallas_src>
import functools

import jax
import jax.numpy as jnp
from jax.experimental import pallas as pl
from jax.experimental.pallas import tpu as pltpu

GAMMA = 2.0            # fixed; realized as explicit squaring in-kernel
ALPHA = 0.25
LANE = 128
MAX_TILE_ROWS = 4096   # 4096*128*4 B = 2 MiB per f32 input per grid step
NUM_SPLITS = 2         # shard the stream across 2 TCs on v7x; cheap elsewhere


def _focal_loss_kernel(pt_ref, tgt_ref, acc_ref, *, tile_rows, rows, steps,
                       needs_mask, binary_targets):
    c = pl.program_id(0)          # parallel (core) axis
    k = pl.program_id(1)          # reduction ("arbitrary") axis

    @pl.when(k == 0)
    def _():
        acc_ref[...] = jnp.zeros_like(acc_ref)

    pt = pt_ref[...].astype(jnp.float32)
    t = tgt_ref[...].astype(jnp.float32)

    if binary_targets:
        # Hard {0,1} targets: single log per element (halves EUP work).
        pos = t > 0.5
        q = jnp.where(pos, pt, 1.0 - pt)
        w = jnp.where(pos, ALPHA, 1.0 - ALPHA)
        one_m_q = 1.0 - q
        loss = -(w * one_m_q * one_m_q) * jnp.log(q)
    else:
        # General (soft-label) form, exactly as in the PyTorch module, with
        # gamma == 2 as explicit squares and the signs/constants folded.
        # TODO(synk): jnp.log1p(-pt) is more accurate as pt -> 1, but the
        # reference module uses log(1 - pt); keep matching semantics.
        one_m_pt = 1.0 - pt
        loss = ((-ALPHA) * t * (one_m_pt * one_m_pt) * jnp.log(pt)
                + (ALPHA - 1.0) * (1.0 - t) * (pt * pt) * jnp.log(one_m_pt))

    def fold(x):
        # (tile_rows, 128) -> resident (8, 128) accumulator: pure VPU vreg
        # adds; no per-step cross-lane XLU reduce.
        return jnp.sum(x.reshape(tile_rows // 8, 8, LANE), axis=0)

    if not needs_mask:
        acc_ref[...] += fold(loss)
    else:
        block = c * steps + k                  # un-clamped logical block id
        row0 = block * tile_rows
        in_bounds = row0 + tile_rows <= rows   # fully-valid tile?

        @pl.when(in_bounds)
        def _():                               # fast path: no mask work
            acc_ref[...] += fold(loss)

        @pl.when(jnp.logical_not(in_bounds))
        def _():
            # Boundary / phantom tile: drop rows past `rows` with a select
            # (select, NOT multiply: out-of-range rows may hold NaN/Inf).
            rid = jax.lax.broadcasted_iota(jnp.int32, (tile_rows, LANE), 0) + row0
            acc_ref[...] += fold(jnp.where(rid < rows, loss, 0.0))


def _focal_elementwise(pt, target):
    return (-ALPHA * (1.0 - pt) ** GAMMA * target * jnp.log(pt)
            - (1.0 - ALPHA) * pt ** GAMMA * (1.0 - target) * jnp.log(1.0 - pt))


def bce_focal_loss(pt, target, reduction="elementwise_mean", *,
                   binary_targets=False, max_tile_rows=MAX_TILE_ROWS):
    """Binary focal loss (alpha=0.25, gamma=2). pt, target: same shape, pt in (0,1).

    pt may be f32 or bf16; target may be f32/bf16/int8/bool — both stream in
    native dtype and are widened to f32 in-kernel (narrow dtypes cut HBM bytes,
    the dominant cost on v5e/v6e).  Set binary_targets=True only for hard
    {0,1} targets (enables the single-log fast path).
    """
    assert pt.shape == target.shape
    size = int(pt.size)
    assert size > 0

    pt_flat = pt.reshape(-1)
    tg_flat = target.reshape(-1)

    chunk = 8 * LANE                        # sublane x lane alignment unit
    main = (size // chunk) * chunk          # kernel handles this aligned prefix
    rows = main // LANE

    total = jnp.float32(0.0)

    if rows > 0:
        tile_rows = max(8, (min(max_tile_rows, rows) // 8) * 8)
        n_tiles = pl.cdiv(rows, tile_rows)
        num_splits = NUM_SPLITS if n_tiles >= NUM_SPLITS else 1
        steps = pl.cdiv(n_tiles, num_splits)
        n_blocks = num_splits * steps                 # >= n_tiles
        needs_mask = n_blocks * tile_rows > rows      # ragged or phantom tile
        clamp = n_blocks > n_tiles                    # at most one phantom

        if clamp:
            in_map = lambda c, k: (jnp.minimum(c * steps + k, n_tiles - 1), 0)
        else:
            in_map = lambda c, k: (c * steps + k, 0)

        if main == size:
            pt2 = pt_flat.reshape(rows, LANE)   # contiguous reshape: free
            tg2 = tg_flat.reshape(rows, LANE)
        else:
            # Ragged input: run pad-free over the aligned prefix; the short
            # tail is handled in plain JAX below (no constant-fill pad of the
            # whole array as before).
            pt2 = pt_flat[:main].reshape(rows, LANE)
            tg2 = tg_flat[:main].reshape(rows, LANE)

        kernel = functools.partial(
            _focal_loss_kernel, tile_rows=tile_rows, rows=rows, steps=steps,
            needs_mask=needs_mask, binary_targets=binary_targets)

        partial = pl.pallas_call(
            kernel,
            out_shape=jax.ShapeDtypeStruct((num_splits * 8, LANE), jnp.float32),
            grid_spec=pltpu.PrefetchScalarGridSpec(
                num_scalar_prefetch=0,
                grid=(num_splits, steps),
                in_specs=[
                    pl.BlockSpec((tile_rows, LANE), in_map),
                    pl.BlockSpec((tile_rows, LANE), in_map),
                ],
                # Output block depends only on the parallel axis => it is the
                # resident per-split accumulator across the "arbitrary" axis.
                out_specs=pl.BlockSpec((8, LANE), lambda c, k: (c, 0)),
            ),
            compiler_params=pltpu.CompilerParams(
                dimension_semantics=("parallel", "arbitrary"),
                vmem_limit_bytes=32 * 1024 * 1024),
        )(pt2, tg2)

        total = total + jnp.sum(partial)

    if main < size:
        # < 1024-element tail: plain JAX (fused elementwise + tiny reduce).
        pt_tail = pt_flat[main:].astype(jnp.float32)
        tg_tail = tg_flat[main:].astype(jnp.float32)
        total = total + jnp.sum(_focal_elementwise(pt_tail, tg_tail))

    if reduction == "elementwise_mean":
        return total * (1.0 / size)
    if reduction == "sum":
        return total
    # TODO(synk): torch's fall-through (return the unreduced loss tensor) would
    # need a separate elementwise-output kernel; not implemented here.
    raise NotImplementedError(f"unsupported reduction: {reduction!r}")


def _reference(pt, target, reduction="elementwise_mean"):
    loss = _focal_elementwise(pt.astype(jnp.float32), target.astype(jnp.float32))
    if reduction == "elementwise_mean":
        return jnp.mean(loss)
    return jnp.sum(loss)


if __name__ == "__main__":
    key = jax.random.PRNGKey(0)
    k1, k2, k3, k4, k5, k6 = jax.random.split(key, 6)

    # 1) aligned NCHW case (2, 4, 16, 16) = 2048 elements, f32.
    shape = (2, 4, 16, 16)
    pt = jax.random.uniform(k1, shape, jnp.float32, minval=0.05, maxval=0.95)
    tgt = (jax.random.uniform(k2, shape, jnp.float32) > 0.5).astype(jnp.float32)

    out = jax.block_until_ready(bce_focal_loss(pt, tgt))
    ref = _reference(pt, tgt)
    assert jnp.allclose(out, ref, rtol=1e-5, atol=1e-6), (out, ref)

    out_s = jax.block_until_ready(bce_focal_loss(pt, tgt, reduction="sum"))
    ref_s = _reference(pt, tgt, reduction="sum")
    assert jnp.allclose(out_s, ref_s, rtol=1e-5, atol=1e-5), (out_s, ref_s)

    # 1b) binary-target fast path (one log / element); targets here are 0/1.
    out_b = jax.block_until_ready(bce_focal_loss(pt, tgt, binary_targets=True))
    assert jnp.allclose(out_b, ref, rtol=1e-5, atol=1e-6), (out_b, ref)

    # 1c) bf16 probabilities (bandwidth-diet contract), widened in-kernel.
    pt_bf = pt.astype(jnp.bfloat16)
    out_bf = jax.block_until_ready(bce_focal_loss(pt_bf, tgt))
    ref_bf = _reference(pt_bf.astype(jnp.float32), tgt)
    assert jnp.allclose(out_bf, ref_bf, rtol=1e-5, atol=1e-6), (out_bf, ref_bf)

    # 2) tiny ragged case (< one 8x128 chunk): pure-JAX tail path.
    shape2 = (2, 3, 7, 5)  # 210 elements
    pt2 = jax.random.uniform(k3, shape2, jnp.float32, minval=0.05, maxval=0.95)
    tg2 = (jax.random.uniform(k4, shape2, jnp.float32) > 0.5).astype(jnp.float32)
    out2 = jax.block_until_ready(bce_focal_loss(pt2, tg2))
    ref2 = _reference(pt2, tg2)
    assert jnp.allclose(out2, ref2, rtol=1e-5, atol=1e-6), (out2, ref2)

    # 3) multi-tile, 2-split path with no masking: 16 rows, 8-row tiles.
    out3 = jax.block_until_ready(bce_focal_loss(pt, tgt, max_tile_rows=8))
    assert jnp.allclose(out3, ref, rtol=1e-5, atol=1e-6), (out3, ref)

    # 4) ragged prefix: 3113 elems -> 24 kernel rows + 41-element JAX tail.
    shape4 = (11, 283)
    pt4 = jax.random.uniform(k5, shape4, jnp.float32, minval=0.05, maxval=0.95)
    tg4 = (jax.random.uniform(k6, shape4, jnp.float32) > 0.5).astype(jnp.float32)
    ref4 = _reference(pt4, tg4)
    # 4a) ragged last tile (24 rows, 16-row tiles): pl.when-gated row mask.
    out4a = jax.block_until_ready(bce_focal_loss(pt4, tg4, max_tile_rows=16))
    assert jnp.allclose(out4a, ref4, rtol=1e-5, atol=1e-6), (out4a, ref4)
    # 4b) odd tile count (3 tiles, 2 splits): clamped phantom block, fully masked.
    out4b = jax.block_until_ready(bce_focal_loss(pt4, tg4, max_tile_rows=8))
    assert jnp.allclose(out4b, ref4, rtol=1e-5, atol=1e-6), (out4b, ref4)

    print("KERNEL_OK")
</pallas_src>

<mosaic_0001>
module attributes {stable_mosaic.version = 11 : i64} {
  func.func @_focal_loss_kernel(%arg0: i32, %arg1: i32, %arg2: memref<16x128xf32, #tpu.memory_space<vmem>>, %arg3: memref<16x128xf32, #tpu.memory_space<vmem>>, %arg4: memref<8x128xf32, #tpu.memory_space<vmem>>) attributes {dimension_semantics = [#tpu.dimension_semantics<parallel>, #tpu.dimension_semantics<arbitrary>], iteration_bounds = array<i64: 1, 1>, scalar_prefetch = 0 : i64, scratch_operands = 0 : i64, tpu.core_type = #tpu.core_type<tc>, window_params = [{transform_indices = @transform_0, window_bounds = array<i64: 16, 128>}, {transform_indices = @transform_1, window_bounds = array<i64: 16, 128>}, {transform_indices = @transform_2, window_bounds = array<i64: 8, 128>}]} {
    %c0_i32 = arith.constant 0 : i32
    %0 = arith.cmpi eq, %arg1, %c0_i32 : i32
    %1 = arith.extui %0 : i1 to i32
    %c0_i32_0 = arith.constant 0 : i32
    %2 = arith.cmpi ne, %1, %c0_i32_0 : i32
    scf.if %2 {
      %cst_12 = arith.constant 0.000000e+00 : f32
      %27 = vector.broadcast %cst_12 : f32 to vector<8x128xf32>
      %c0_13 = arith.constant 0 : index
      %c0_14 = arith.constant 0 : index
      %28 = vector.load %arg4[%c0_13, %c0_14] : memref<8x128xf32, #tpu.memory_space<vmem>>, vector<8x128xf32>
      tpu.vector_store %arg4[%c0_13, %c0_14], %27 {strides = array<i32>} : memref<8x128xf32, #tpu.memory_space<vmem>>, vector<8x128xf32>,
    } else {
    }
    %c0 = arith.constant 0 : index
    %c0_1 = arith.constant 0 : index
    %3 = vector.load %arg2[%c0, %c0_1] : memref<16x128xf32, #tpu.memory_space<vmem>>, vector<16x128xf32>
    %c0_2 = arith.constant 0 : index
    %c0_3 = arith.constant 0 : index
    %4 = vector.load %arg3[%c0_2, %c0_3] : memref<16x128xf32, #tpu.memory_space<vmem>>, vector<16x128xf32>
    %cst = arith.constant 1.000000e+00 : f32
    %5 = vector.broadcast %cst : f32 to vector<16x128xf32>
    %6 = arith.subf %5, %3 : vector<16x128xf32>
    %cst_4 = arith.constant -2.500000e-01 : f32
    %7 = vector.broadcast %cst_4 : f32 to vector<16x128xf32>
    %8 = arith.mulf %7, %4 : vector<16x128xf32>
    %9 = arith.mulf %6, %6 : vector<16x128xf32>
    %10 = arith.mulf %8, %9 : vector<16x128xf32>
    %11 = math.log %3 : vector<16x128xf32>
    %12 = arith.mulf %10, %11 : vector<16x128xf32>
    %cst_5 = arith.constant 1.000000e+00 : f32
    %13 = vector.broadcast %cst_5 : f32 to vector<16x128xf32>
    %14 = arith.subf %13, %4 : vector<16x128xf32>
    %cst_6 = arith.constant -7.500000e-01 : f32
    %15 = vector.broadcast %cst_6 : f32 to vector<16x128xf32>
    %16 = arith.mulf %15, %14 : vector<16x128xf32>
    %17 = arith.mulf %3, %3 : vector<16x128xf32>
    %18 = arith.mulf %16, %17 : vector<16x128xf32>
    %19 = math.log %6 : vector<16x128xf32>
    %20 = arith.mulf %18, %19 : vector<16x128xf32>
    %21 = arith.addf %12, %20 : vector<16x128xf32>
    %c0_7 = arith.constant 0 : index
    %c0_8 = arith.constant 0 : index
    %22 = vector.load %arg4[%c0_7, %c0_8] : memref<8x128xf32, #tpu.memory_space<vmem>>, vector<8x128xf32>
    %23 = vector.shape_cast %21 : vector<16x128xf32> to vector<2x8x128xf32>
    %cst_9 = arith.constant dense<0.000000e+00> : vector<8x128xf32>
    %24 = vector.multi_reduction <add>, %23, %cst_9 [0] : vector<2x8x128xf32> to vector<8x128xf32>
    %25 = arith.addf %22, %24 : vector<8x128xf32>
    %c0_10 = arith.constant 0 : index
    %c0_11 = arith.constant 0 : index
    %26 = vector.load %arg4[%c0_10, %c0_11] : memref<8x128xf32, #tpu.memory_space<vmem>>, vector<8x128xf32>
    tpu.vector_store %arg4[%c0_10, %c0_11], %25 {strides = array<i32>} : memref<8x128xf32, #tpu.memory_space<vmem>>, vector<8x128xf32>,
    return
  }
  func.func @transform_0(%arg0: i32, %arg1: i32) -> (i32, i32) {
    %c1_i32 = arith.constant 1 : i32
    %0 = arith.muli %arg0, %c1_i32 : i32
    %1 = arith.addi %0, %arg1 : i32
    %c0_i32 = arith.constant 0 : i32
    %c0_i32_0 = arith.constant 0 : i32
    return %1, %c0_i32 : i32, i32
  }
  func.func @transform_1(%arg0: i32, %arg1: i32) -> (i32, i32) {
    %c1_i32 = arith.constant 1 : i32
    %0 = arith.muli %arg0, %c1_i32 : i32
    %1 = arith.addi %0, %arg1 : i32
    %c0_i32 = arith.constant 0 : i32
    %c0_i32_0 = arith.constant 0 : i32
    return %1, %c0_i32 : i32, i32
  }
  func.func @transform_2(%arg0: i32, %arg1: i32) -> (i32, i32) {
    %c0_i32 = arith.constant 0 : i32
    %c0_i32_0 = arith.constant 0 : i32
    return %arg0, %c0_i32 : i32, i32
  }
}

</mosaic_0001>

<bundles_post_ra>
// kernel: tpu_custom_call.1
= control target key start
LH: loop header
LB: loop body
LE: loop exit
PB: predicated region body
PF: predicated region fallthrough
CT: control target
= control target key end

     0   :  { %7 = vsyncpa [#allocation3], 0  ;;  %s253_s0 = inlined_call_operand.hbm [shape: f32[16,128], index: 0, kind: input, shape index: {}]   ;;  %s254_s1 = inlined_call_operand.hbm [shape: f32[16,128], index: 1, kind: input, shape index: {}]   ;;  %s255_s2 = inlined_call_operand.hbm [shape: f32[8,128], index: 2, kind: output, shape index: {}]  }
   0x1   :  { %8 = vsyncpa [#allocation6], 0 }
   0x2   :  { %9 = vsyncpa [#allocation4], 0  ;;  %s197_s9 = smov [#allocation2]   ;;  %s125_s13 = scalar_lea.hbm %s253_s0, 256 }
   0x3   :  { %s19_s10 = sshll.u32 %s197_s9, 4  ;;  %p126_p0 = scmp.ne.s32.totalorder %s253_s0, %s125_s13  ;;  %s20_s10 = int_to_ptr.vmem [resolvable:$true] %s19_s10 }
   0x4   :  { %p129_p1 = scmp.lt.u32.totalorder %s125_s13, %s253_s0 }
   0x6   :  { %p131_p2 = pnand %p129_p1, %p126_p0 }
   0x8   :  { %134 = shalt.err (!%p131_p2)
}
   0x9   :  { %s135_s18 = scalar_lea.vmem %s20_s10, 256  ;;  %p140_p4 = scmp.lt.s32.totalorder %s20_s10, %s20_s10 }
   0xa   :  { %p136_p3 = scmp.ne.s32.totalorder %s20_s10, %s135_s18  ;;  %p141_p5 = scmp.lt.s32.totalorder %s135_s18, %s135_s18 }
   0xc   :  { %p142_p6 = por %p141_p5, %p140_p4 }
   0xe   :  { %p143_p7 = pnand %p142_p6, %p136_p3 }
  0x10   :  { %146 = shalt.err (!%p143_p7)
}
  0x11   :  { %s198_s19 = smov 128   ;;  %s199_s20 = smov 8  }
  0x12   :  { %25 = dma.hbm_to_vmem [thread:$0]  %s253_s0, 256, %s20_s10, [#allocation3], %s198_s19, %s198_s19, %s199_s20  }
  0x13   :  { %s200_s23 = smov [#allocation5]   ;;  %s147_s27 = scalar_lea.hbm %s254_s1, 256 }
  0x14   :  { %s35_s24 = sshll.u32 %s200_s23, 4  ;;  %p148_p8 = scmp.ne.s32.totalorder %s254_s1, %s147_s27  ;;  %s36_s24 = int_to_ptr.vmem [resolvable:$true] %s35_s24 }
  0x15   :  { %p151_p9 = scmp.lt.u32.totalorder %s147_s27, %s254_s1 }
  0x17   :  { %p153_p10 = pnand %p151_p9, %p148_p8 }
  0x19   :  { %156 = shalt.err (!%p153_p10)
}
  0x1a   :  { %s157_s4 = scalar_lea.vmem %s36_s24, 256  ;;  %p162_p12 = scmp.lt.s32.totalorder %s36_s24, %s36_s24 }
  0x1b   :  { %p158_p11 = scmp.ne.s32.totalorder %s36_s24, %s157_s4  ;;  %p163_p13 = scmp.lt.s32.totalorder %s157_s4, %s157_s4 }
  0x1d   :  { %p164_p0 = por %p163_p13, %p162_p12 }
  0x1f   :  { %p165_p1 = pnand %p164_p0, %p158_p11 }
  0x21   :  { %168 = shalt.err (!%p165_p1)
}
  0x22   :  { %41 = dma.hbm_to_vmem [thread:$0]  %s254_s1, 256, %s36_s24, [#allocation6], %s198_s19, %s198_s19, %s199_s20  }
  0x23   :  { %191 = dma.done.wait [#allocation3], 256  }
  0x24   :  { %192 = vsyncadd [#allocation3], 4294967040 }
  0x25   :  { %193 = dma.done.wait [#allocation6], 256  }
  0x26   :  { %194 = vsyncadd [#allocation6], 4294967040  ;;  %v57_v0 = vld [vmem:[#allocation2] sm:$0xff]  ;;  %v58_v1 = vld [vmem:[#allocation2 + $0x8] sm:$0xff]  ;;  %s201_s1 = smov [#allocation7]  }
  0x27   :  { %v61_v2 = vsub.f32 1.0, %v57_v0  ;;  %v62_v3 = vsub.f32 1.0, %v58_v1  ;;  %117 = vlog2.f32 %v57_v0  ;;  %v59_v4 = vld [vmem:[#allocation5] sm:$0xff]  ;;  %v60_v5 = vld [vmem:[#allocation5 + $0x8] sm:$0xff]  ;;  %v79_v13 = vmul.f32 %v57_v0, %v57_v0  ;;  %s101_s6 = sshll.u32 %s201_s1, 4  ;;  %s102_s6 = int_to_ptr.vmem [resolvable:$true] %s101_s6 }
  0x28   :  { %119 = vlog2.f32 %v58_v1  ;;  %v75_v6 = vsub.f32 1.0, %v59_v4  ;;  %v76_v7 = vsub.f32 1.0, %v60_v5  ;;  %v63_v8 = vmul.f32 -0.25, %v59_v4  ;;  %s169_s7 = scalar_lea.vmem %s102_s6, 128  ;;  %p174_p3 = scmp.lt.s32.totalorder %s102_s6, %s102_s6 }
  0x29   :  { %121 = vlog2.f32 %v61_v2  ;;  %v65_v9 = vmul.f32 %v61_v2, %v61_v2  ;;  %v64_v10 = vmul.f32 -0.25, %v60_v5  ;;  %v66_v11 = vmul.f32 %v62_v3, %v62_v3  ;;  %p170_p2 = scmp.ne.s32.totalorder %s102_s6, %s169_s7  ;;  %p175_p4 = scmp.lt.s32.totalorder %s169_s7, %s169_s7 }
  0x2a   :  { %123 = vlog2.f32 %v62_v3  ;;  %v77_v12 = vmul.f32 -0.75, %v75_v6  ;;  %v78_v14 = vmul.f32 -0.75, %v76_v7  ;;  %v80_v15 = vmul.f32 %v58_v1, %v58_v1 }
  0x2b   :  { %v67_v17 = vmul.f32 %v65_v9, %v63_v8  ;;  %v68_v19 = vmul.f32 %v66_v11, %v64_v10  ;;  %p176_p5 = por %p175_p4, %p174_p3 }
  0x2c   :  { %v81_v22 = vmul.f32 %v79_v13, %v77_v12  ;;  %v82_v24 = vmul.f32 %v80_v15, %v78_v14 }
  0x2d   :  { %p177_p6 = pnand %p176_p5, %p170_p2 }
  0x31   :  { %v118_v16 = vpop.eup %117 }
  0x32   :  { %v120_v18 = vpop.eup %119  ;;  %v70_v20 = vmul.f32 0.6931472, %v118_v16 }
  0x33   :  { %v72_v21 = vmul.f32 0.6931472, %v120_v18  ;;  %v122_v23 = vpop.eup %121 }
  0x34   :  { %v124_v25 = vpop.eup %123  ;;  %v73_v26 = vmul.f32 %v70_v20, %v67_v17  ;;  %v84_v27 = vmul.f32 0.6931472, %v122_v23 }
  0x35   :  { %v74_v28 = vmul.f32 %v72_v21, %v68_v19  ;;  %v86_v29 = vmul.f32 0.6931472, %v124_v25 }
  0x36   :  { %v87_v30 = vmul.f32 %v84_v27, %v81_v22 }
  0x37   :  { %v88_v31 = vmul.f32 %v86_v29, %v82_v24 }
  0x38   :  { %v89_v32 = vadd.f32 %v87_v30, %v73_v26 }
  0x39   :  { %v90_v33 = vadd.f32 %v88_v31, %v74_v28 }
  0x3b   :  { %v92_v34 = vadd.f32 %v90_v33, %v89_v32 }
  0x3d   :  { %94 = vst [vmem:[#allocation7] sm:$0xff] %v92_v34 }
  0x3e   :  { %180 = shalt.err (!%p177_p6)
}
  0x3f   :  { %s181_s10 = scalar_lea.hbm %s255_s2, 128 }
  0x40   :  { %p182_p7 = scmp.ne.s32.totalorder %s255_s2, %s181_s10  ;;  %p185_p8 = scmp.lt.u32.totalorder %s181_s10, %s255_s2 }
  0x42   :  { %p187_p9 = pnand %p185_p8, %p182_p7 }
  0x44   :  { %190 = shalt.err (!%p187_p9)
}
  0x45   :  { %104 = dma.vmem_to_hbm [thread:$0]  %s102_s6, 128, %s255_s2, [#allocation4]  }
  0x46   :  { %195 = dma.done.wait [#allocation4], 128  }
  0x47   :  { %196 = vsyncadd [#allocation4], 4294967168 }
  0x48   :  { %108 = vsyncpa [#allocation3], 1 }
  0x49   :  { %109 = vsyncpa [#allocation6], 1 }
  0x4a   :  { %110 = vsyncpa [#allocation4], 1 }

</bundles_post_ra>
